<compile_context>
chip_gen: v7x
topology: tpu7x:2x2x1
jax: 0.10.0
libtpu: 0.0.40
codegen_flags: <defaults>
</compile_context>

<pallas_src>
import functools
import math

import numpy as np
import jax
import jax.numpy as jnp
from jax.experimental import pallas as pl
from jax.experimental.pallas import tpu as pltpu


def _celltypenet_kernel(x_ref, prx_ref, whead_ref, b1_ref, w2_ref, b2_ref, out_ref,
                        *, n_mid, inv_logscale, mxu_dtype):
    # Projection X -> Z (dropout p=0 is identity). Optional in-kernel low-precision cast of
    # the MXU operands (no extra HBM pass); f32 accumulate either way.
    x = x_ref[...]
    if mxu_dtype is not None:
        x = x.astype(mxu_dtype)
    prj = jnp.dot(x, prx_ref[...], preferred_element_type=jnp.float32)

    # InstNrmSimple with noise=(0,0): emb = tanh((log(prj) - logscale) / logscale).
    # TODO(synk): torch.poisson noise injection not implemented; with the module defaults
    # noise=(0,0) the injected noise is exactly zero.
    emb = jnp.tanh(jnp.log(prj) * inv_logscale - 1.0)

    # Fused head matmul: [pre-activation of rcn layer 1 | fine logits].
    # W1 is placed first so h (the operand of the next MXU pass) starts at lane 0.
    head = jnp.dot(emb, whead_ref[...], preferred_element_type=jnp.float32)
    h = jnp.maximum(head[:, :n_mid] + b1_ref[...], 0.0)
    fine = head[:, n_mid:]

    # rcn layer 2: Linear -> ReLU
    xrcn = jnp.maximum(
        jnp.dot(h, w2_ref[...], preferred_element_type=jnp.float32) + b2_ref[...], 0.0)

    # Single coalesced output slab per tile: [fine | xrcn | emb], cast on store.
    out_ref[...] = jnp.concatenate([fine, xrcn, emb], axis=1).astype(out_ref.dtype)


def celltypenet_forward(x, wenc, wdcd, w1, b1, w2, b2, *, mxpr=90000.0, scale=15000.0,
                        block_b=4096, mxu_dtype=None, out_dtype=jnp.float32):
    """CellTypeNet forward (rnd=False) as a batch-tiled Pallas kernel.

    Returns (fine, Xrcn, emb), matching the PyTorch module's forward().
    mxu_dtype: optional dtype for the X@prx MXU operands (cast happens *inside* the kernel).
    out_dtype: dtype of the fused output slab (bf16 halves the dominant writeback stream).
    """
    B, n_gns = x.shape
    n_bit = wenc.shape[1]
    n_cat = wdcd.shape[1]
    n_mid = w1.shape[1]
    n_gsub = w2.shape[1]
    n_out = n_cat + n_gsub + n_bit

    # Batch-invariant encoder transform (get_encmat), hoisted out of the grid loop
    # (pure weight transform, computed once in f32).
    wexp = jnp.exp(wenc.astype(jnp.float32))
    prx = wexp * (mxpr / jnp.sum(wexp))
    prx_in = prx.astype(mxu_dtype) if mxu_dtype is not None else prx

    # Fuse the two matmuls that consume emb: [W1 | W_dcd] (W1 first -> h at lane 0).
    w_head = jnp.concatenate([w1.astype(jnp.float32), wdcd.astype(jnp.float32)], axis=1)
    b1_2d = b1.reshape(1, n_mid).astype(jnp.float32)
    b2_2d = b2.reshape(1, n_gsub).astype(jnp.float32)
    w2_f32 = w2.astype(jnp.float32)

    inv_logscale = 1.0 / math.log(scale)

    # --- batch tile selection ---
    # Start from a large tile (per-step overhead ~0.35us is amortized), then:
    #   * keep >=2 grid steps so dimension_semantics=("parallel",) can use both v7x TCs,
    #   * cap so double-buffered X + out tiles stay well under the default scoped-VMEM limit,
    #   * keep a multiple of 8 (sublane constraint).
    tb = min(block_b, -(-pl.cdiv(B, 2) // 8) * 8)
    row_bytes = (n_gns * np.dtype(x.dtype).itemsize
                 + n_out * np.dtype(out_dtype).itemsize)
    vmem_rows = max(8, ((24 * 1024 * 1024) // (2 * row_bytes)) // 8 * 8)
    tb = max(8, min(-(-tb // 8) * 8, vmem_rows))
    grid = (pl.cdiv(B, tb),)

    kernel = functools.partial(_celltypenet_kernel, n_mid=n_mid,
                               inv_logscale=inv_logscale, mxu_dtype=mxu_dtype)

    def resident(shape):  # weights: constant block index -> stay resident in VMEM
        return pl.BlockSpec(shape, lambda i: (0, 0))

    out = pl.pallas_call(
        kernel,
        grid=grid,
        in_specs=[
            pl.BlockSpec((tb, n_gns), lambda i: (i, 0)),   # X streamed per batch tile
            resident((n_gns, n_bit)),                      # prx
            resident((n_bit, n_mid + n_cat)),              # [W1 | W_dcd]
            resident((1, n_mid)),                          # b1
            resident((n_mid, n_gsub)),                     # W2
            resident((1, n_gsub)),                         # b2
        ],
        out_specs=pl.BlockSpec((tb, n_out), lambda i: (i, 0)),
        out_shape=jax.ShapeDtypeStruct((B, n_out), out_dtype),
        compiler_params=pltpu.CompilerParams(dimension_semantics=("parallel",)),
    )(x, prx_in, w_head, b1_2d, w2_f32, b2_2d)

    fine = out[:, :n_cat]
    xrcn = out[:, n_cat:n_cat + n_gsub]
    emb = out[:, n_cat + n_gsub:]
    return fine, xrcn, emb


def celltypenet_reference(x, wenc, wdcd, w1, b1, w2, b2, *, mxpr=90000.0, scale=15000.0,
                          mxu_dtype=None):
    """Plain-JAX reference mirroring the PyTorch forward (rnd=False, drprt=0, noise=(0,0))."""
    logscale = math.log(scale)
    wexp = jnp.exp(wenc.astype(jnp.float32))
    prx = wexp / jnp.sum(wexp) * mxpr
    x32 = x.astype(jnp.float32)
    if mxu_dtype is not None:
        x32 = x32.astype(mxu_dtype)
        prx = prx.astype(mxu_dtype)
    prj = jnp.dot(x32, prx, preferred_element_type=jnp.float32)
    emb = jnp.tanh((jnp.log(prj) - logscale) / logscale)
    fine = emb @ wdcd
    h = jnp.maximum(emb @ w1 + b1, 0.0)
    xrcn = jnp.maximum(h @ w2 + b2, 0.0)
    return fine, xrcn, emb


if __name__ == "__main__":
    # Small, module-consistent shapes. B=250 is deliberately NOT a multiple of the tile so
    # the ragged last tile (Pallas block padding + masked writeback) is exercised; the
    # v7x-friendly tile cap gives tb=128 -> a 2-step pipelined grid.
    B = 250
    n_gns = 64
    n_bit = 14
    n_cat = 10
    n_gsub = 24
    n_mid = max(n_gsub // 2, n_bit)   # = 14, as in the module

    key = jax.random.PRNGKey(0)
    k_x, k_enc, k_dcd, k_w1, k_b1, k_w2, k_b2 = jax.random.split(key, 7)

    x = jax.random.uniform(k_x, (B, n_gns), jnp.float32, minval=0.0, maxval=100.0)
    wenc = jax.random.normal(k_enc, (n_gns, n_bit), jnp.float32)
    wdcd = jax.random.normal(k_dcd, (n_bit, n_cat), jnp.float32)
    lim1 = 1.0 / math.sqrt(n_bit)
    lim2 = 1.0 / math.sqrt(n_mid)
    w1 = jax.random.uniform(k_w1, (n_bit, n_mid), jnp.float32, minval=-lim1, maxval=lim1)
    b1 = jax.random.uniform(k_b1, (n_mid,), jnp.float32, minval=-lim1, maxval=lim1)
    w2 = jax.random.uniform(k_w2, (n_mid, n_gsub), jnp.float32, minval=-lim2, maxval=lim2)
    b2 = jax.random.uniform(k_b2, (n_gsub,), jnp.float32, minval=-lim2, maxval=lim2)

    # 1) Default path (f32 MXU, f32 output): exact check against the plain-JAX reference.
    fine, xrcn, emb = jax.block_until_ready(
        celltypenet_forward(x, wenc, wdcd, w1, b1, w2, b2))
    fine_r, xrcn_r, emb_r = celltypenet_reference(x, wenc, wdcd, w1, b1, w2, b2)
    assert fine.shape == (B, n_cat)
    assert xrcn.shape == (B, n_gsub)
    assert emb.shape == (B, n_bit)
    assert jnp.allclose(fine, fine_r, rtol=1e-4, atol=1e-4)
    assert jnp.allclose(xrcn, xrcn_r, rtol=1e-4, atol=1e-4)
    assert jnp.allclose(emb, emb_r, rtol=1e-4, atol=1e-4)

    # 2) bf16 MXU-operand path (in-kernel cast, no extra HBM pass over X): check against a
    #    precision-matched reference.
    fine_b, xrcn_b, emb_b = jax.block_until_ready(
        celltypenet_forward(x, wenc, wdcd, w1, b1, w2, b2, mxu_dtype=jnp.bfloat16))
    fine_rb, xrcn_rb, emb_rb = celltypenet_reference(x, wenc, wdcd, w1, b1, w2, b2,
                                                     mxu_dtype=jnp.bfloat16)
    assert jnp.allclose(fine_b, fine_rb, rtol=5e-3, atol=5e-3)
    assert jnp.allclose(xrcn_b, xrcn_rb, rtol=5e-3, atol=5e-3)
    assert jnp.allclose(emb_b, emb_rb, rtol=5e-3, atol=5e-3)

    # 3) bf16 output-slab path (halves the dominant writeback HBM stream): loose check
    #    against the f32 reference (the only difference is the final cast).
    fine_o, xrcn_o, emb_o = jax.block_until_ready(
        celltypenet_forward(x, wenc, wdcd, w1, b1, w2, b2, out_dtype=jnp.bfloat16))
    assert jnp.all(jnp.isfinite(fine_o.astype(jnp.float32)))
    assert jnp.allclose(fine_o.astype(jnp.float32), fine_r, rtol=2e-2, atol=2e-2)
    assert jnp.allclose(xrcn_o.astype(jnp.float32), xrcn_r, rtol=2e-2, atol=2e-2)
    assert jnp.allclose(emb_o.astype(jnp.float32), emb_r, rtol=2e-2, atol=2e-2)

    print("KERNEL_OK")
</pallas_src>

<mosaic_0001>
module attributes {stable_mosaic.version = 11 : i64} {
  func.func @_celltypenet_kernel(%arg0: i32, %arg1: memref<128x64xf32, #tpu.memory_space<vmem>>, %arg2: memref<64x14xf32, #tpu.memory_space<vmem>>, %arg3: memref<14x24xf32, #tpu.memory_space<vmem>>, %arg4: memref<1x14xf32, #tpu.memory_space<vmem>>, %arg5: memref<14x24xf32, #tpu.memory_space<vmem>>, %arg6: memref<1x24xf32, #tpu.memory_space<vmem>>, %arg7: memref<128x48xf32, #tpu.memory_space<vmem>>) attributes {dimension_semantics = [#tpu.dimension_semantics<parallel>], iteration_bounds = array<i64: 2>, scalar_prefetch = 0 : i64, scratch_operands = 0 : i64, tpu.core_type = #tpu.core_type<tc>, window_params = [{transform_indices = @transform_0, window_bounds = array<i64: 128, 64>}, {pipeline_mode = #tpu.pipeline_mode<synchronous>, transform_indices = @transform_1, window_bounds = array<i64: 64, 14>}, {pipeline_mode = #tpu.pipeline_mode<synchronous>, transform_indices = @transform_2, window_bounds = array<i64: 14, 24>}, {pipeline_mode = #tpu.pipeline_mode<synchronous>, transform_indices = @transform_3, window_bounds = array<i64: 1, 14>}, {pipeline_mode = #tpu.pipeline_mode<synchronous>, transform_indices = @transform_4, window_bounds = array<i64: 14, 24>}, {pipeline_mode = #tpu.pipeline_mode<synchronous>, transform_indices = @transform_5, window_bounds = array<i64: 1, 24>}, {transform_indices = @transform_6, window_bounds = array<i64: 128, 48>}]} {
    %c0 = arith.constant 0 : index
    %c0_0 = arith.constant 0 : index
    %0 = vector.load %arg1[%c0, %c0_0] : memref<128x64xf32, #tpu.memory_space<vmem>>, vector<128x64xf32>
    %c0_1 = arith.constant 0 : index
    %c0_2 = arith.constant 0 : index
    %1 = vector.load %arg2[%c0_1, %c0_2] : memref<64x14xf32, #tpu.memory_space<vmem>>, vector<64x14xf32>
    %cst = arith.constant dense<0.000000e+00> : vector<128x14xf32>
    %2 = tpu.matmul %0, %1, %cst {dimension_numbers = #tpu.dot_dimension_numbers<[1], [0], [0], [1], [0, 0, 1, 1], [], []>} : vector<128x64xf32>, vector<64x14xf32>, vector<128x14xf32> -> vector<128x14xf32>
    %3 = math.log %2 : vector<128x14xf32>
    %cst_3 = arith.constant 0.10399545 : f32
    %4 = vector.broadcast %cst_3 : f32 to vector<128x14xf32>
    %5 = arith.mulf %3, %4 : vector<128x14xf32>
    %cst_4 = arith.constant 1.000000e+00 : f32
    %6 = vector.broadcast %cst_4 : f32 to vector<128x14xf32>
    %7 = arith.subf %5, %6 : vector<128x14xf32>
    %8 = math.tanh %7 : vector<128x14xf32>
    %c0_5 = arith.constant 0 : index
    %c0_6 = arith.constant 0 : index
    %9 = vector.load %arg3[%c0_5, %c0_6] : memref<14x24xf32, #tpu.memory_space<vmem>>, vector<14x24xf32>
    %cst_7 = arith.constant dense<0.000000e+00> : vector<128x24xf32>
    %10 = tpu.matmul %8, %9, %cst_7 {dimension_numbers = #tpu.dot_dimension_numbers<[1], [0], [0], [1], [0, 0, 1, 1], [], []>} : vector<128x14xf32>, vector<14x24xf32>, vector<128x24xf32> -> vector<128x24xf32>
    %11 = vector.extract_strided_slice %10 {offsets = [0, 0], sizes = [128, 14], strides = [1, 1]} : vector<128x24xf32> to vector<128x14xf32>
    %c0_8 = arith.constant 0 : index
    %c0_9 = arith.constant 0 : index
    %12 = vector.load %arg4[%c0_8, %c0_9] : memref<1x14xf32, #tpu.memory_space<vmem>>, vector<1x14xf32>
    %13 = vector.broadcast %12 : vector<1x14xf32> to vector<128x14xf32>
    %14 = arith.addf %11, %13 : vector<128x14xf32>
    %cst_10 = arith.constant 0.000000e+00 : f32
    %15 = vector.broadcast %cst_10 : f32 to vector<128x14xf32>
    %16 = arith.maximumf %14, %15 : vector<128x14xf32>
    %17 = vector.extract_strided_slice %10 {offsets = [0, 14], sizes = [128, 10], strides = [1, 1]} : vector<128x24xf32> to vector<128x10xf32>
    %c0_11 = arith.constant 0 : index
    %c0_12 = arith.constant 0 : index
    %18 = vector.load %arg5[%c0_11, %c0_12] : memref<14x24xf32, #tpu.memory_space<vmem>>, vector<14x24xf32>
    %cst_13 = arith.constant dense<0.000000e+00> : vector<128x24xf32>
    %19 = tpu.matmul %16, %18, %cst_13 {dimension_numbers = #tpu.dot_dimension_numbers<[1], [0], [0], [1], [0, 0, 1, 1], [], []>} : vector<128x14xf32>, vector<14x24xf32>, vector<128x24xf32> -> vector<128x24xf32>
    %c0_14 = arith.constant 0 : index
    %c0_15 = arith.constant 0 : index
    %20 = vector.load %arg6[%c0_14, %c0_15] : memref<1x24xf32, #tpu.memory_space<vmem>>, vector<1x24xf32>
    %21 = vector.broadcast %20 : vector<1x24xf32> to vector<128x24xf32>
    %22 = arith.addf %19, %21 : vector<128x24xf32>
    %cst_16 = arith.constant 0.000000e+00 : f32
    %23 = vector.broadcast %cst_16 : f32 to vector<128x24xf32>
    %24 = arith.maximumf %22, %23 : vector<128x24xf32>
    %25 = tpu.concatenate %17, %24, %8 in 1 : vector<128x10xf32>, vector<128x24xf32>, vector<128x14xf32> -> vector<128x48xf32>
    %c0_17 = arith.constant 0 : index
    %c0_18 = arith.constant 0 : index
    %26 = vector.load %arg7[%c0_17, %c0_18] : memref<128x48xf32, #tpu.memory_space<vmem>>, vector<128x48xf32>
    tpu.vector_store %arg7[%c0_17, %c0_18], %25 {strides = array<i32>} : memref<128x48xf32, #tpu.memory_space<vmem>>, vector<128x48xf32>,
    return
  }
  func.func @transform_0(%arg0: i32) -> (i32, i32) {
    %c0_i32 = arith.constant 0 : i32
    %c0_i32_0 = arith.constant 0 : i32
    return %arg0, %c0_i32 : i32, i32
  }
  func.func @transform_1(%arg0: i32) -> (i32, i32) {
    %c0_i32 = arith.constant 0 : i32
    %c0_i32_0 = arith.constant 0 : i32
    %c0_i32_1 = arith.constant 0 : i32
    return %c0_i32, %c0_i32_0 : i32, i32
  }
  func.func @transform_2(%arg0: i32) -> (i32, i32) {
    %c0_i32 = arith.constant 0 : i32
    %c0_i32_0 = arith.constant 0 : i32
    %c0_i32_1 = arith.constant 0 : i32
    return %c0_i32, %c0_i32_0 : i32, i32
  }
  func.func @transform_3(%arg0: i32) -> (i32, i32) {
    %c0_i32 = arith.constant 0 : i32
    %c0_i32_0 = arith.constant 0 : i32
    %c0_i32_1 = arith.constant 0 : i32
    return %c0_i32, %c0_i32_0 : i32, i32
  }
  func.func @transform_4(%arg0: i32) -> (i32, i32) {
    %c0_i32 = arith.constant 0 : i32
    %c0_i32_0 = arith.constant 0 : i32
    %c0_i32_1 = arith.constant 0 : i32
    return %c0_i32, %c0_i32_0 : i32, i32
  }
  func.func @transform_5(%arg0: i32) -> (i32, i32) {
    %c0_i32 = arith.constant 0 : i32
    %c0_i32_0 = arith.constant 0 : i32
    %c0_i32_1 = arith.constant 0 : i32
    return %c0_i32, %c0_i32_0 : i32, i32
  }
  func.func @transform_6(%arg0: i32) -> (i32, i32) {
    %c0_i32 = arith.constant 0 : i32
    %c0_i32_0 = arith.constant 0 : i32
    return %arg0, %c0_i32 : i32, i32
  }
}

</mosaic_0001>

<bundles_post_ra>
// kernel: tpu_custom_call.1
= control target key start
LH: loop header
LB: loop body
LE: loop exit
PB: predicated region body
PF: predicated region fallthrough
CT: control target
= control target key end

     0   :  { %s1684_s21 = smov 0   ;;  %s1993_s0 = inlined_call_operand.vmem [shape: f32[250,64], index: 0, kind: input, shape index: {}]   ;;  %s1994_s1 = inlined_call_operand.vmem [shape: f32[64,14], index: 1, kind: input, shape index: {}]   ;;  %s1995_s2 = inlined_call_operand.vmem [shape: f32[14,24], index: 2, kind: input, shape index: {}]   ;;  %s1996_s3 = inlined_call_operand.vmem [shape: f32[1,14], index: 3, kind: input, shape index: {}]   ;;  %s1997_s4 = inlined_call_operand.vmem [shape: f32[14,24], index: 4, kind: input, shape index: {}]   ;;  %s1998_s5 = inlined_call_operand.vmem [shape: f32[1,24], index: 5, kind: input, shape index: {}]   ;;  %s1999_s6 = inlined_call_operand.vmem [shape: f32[250,48], index: 6, kind: output, shape index: {}]  }
   0x1 LB: > { %s1296_s22 = sadd.s32 4294967295, %s1643_s21   ;;  %p1300_p0 = scmp.ge.s32.totalorder %s1643_s21, 1  ;;  %s1643_s21 = sphi %s1684_s21, %s16_s21  }
   0x2   : > { %p213_p1 = scmp.lt.s32.totalorder %s1643_s21, 3 }
   0x4   : > { %p214_p2 = pnand %p1300_p0, %p213_p1 }
   0x5   : > { %v271_v0 = vld [vmem:[%s1994_s1] sm:$0xff] (!%p214_p2)  ;;  %v272_v1 = vld [vmem:[%s1994_s1 + $0x8] sm:$0xff] (!%p214_p2)  ;;  %v273_v2 = vld [vmem:[%s1994_s1 + $0x10] sm:$0xff] (!%p214_p2)  ;;  %s1301_s29 = sshll.u32 (!%p214_p2), %s1296_s22, 4  ;;  %vm604_vm0 = vcmask (!%p214_p2), 1045504   ;;  %vm279_vm1 = vcmask (!%p214_p2), 523264  }
   0x6   : > { %217 = sbr.rel (%p214_p2) target bundleno = 852 (0x354), region = 44  ;;  %v1531_v3 = vpack.c.bf16 (!%p214_p2), %v272_v1, %v271_v0  ;;  %v274_v4 = vld [vmem:[%s1994_s1 + $0x18] sm:$0xff] (!%p214_p2)  ;;  %p244_p3 = scmp.lt.s32.totalorder (!%p214_p2), %s1301_s29, 31  ;;  %v275_v6 = vld [vmem:[%s1994_s1 + $0x20] sm:$0xff] (!%p214_p2)  ;;  %v276_v7 = vld [vmem:[%s1994_s1 + $0x28] sm:$0xff] (!%p214_p2)  ;;  %vm1645_vm2 = vmmov (!%p214_p2), 1  }
   0x7   : > { %v1535_v5 = vpack.c.bf16 (!%p214_p2), %v274_v4, %v273_v2  ;;  %v553_v8 = vld [vmem:[%s1995_s2] sm:$0xff] (!%p214_p2)  ;;  %v554_v9 = vld [vmem:[%s1995_s2 + $0x8] sm:$0x3f] (!%p214_p2)  ;;  %v1539_v11 = vpack.c.bf16 (!%p214_p2), %v276_v7, %v275_v6  ;;  %vm1719_vm3 = vmpackc.low (!%p214_p2), %vm604_vm0, %vm1645_vm2  ;;  %vm555_vm4 = vcmask (!%p214_p2), 113664   ;;  %s1646_s25 = smov (!%p214_p2), 34   ;;  %s1647_s9 = smov (!%p214_p2), 114  }
   0x8   : > { %1532 = vmatprep.subr.bf16.mxu0 (!%p214_p2), %v1531_v3  ;;  %v1547_v10 = vpack.c.bf16 (!%p214_p2), %v554_v9, %v553_v8  ;;  %v277_v13 = vld [vmem:[%s1994_s1 + $0x30] sm:$0xff] (!%p214_p2)  ;;  %v278_v14 = vld [vmem:[%s1994_s1 + $0x38] sm:$0xff] (!%p214_p2)  ;;  %s1648_s12 = smov (!%p214_p2), 10   ;;  %vm1189_vm5 = vcmask (!%p214_p2), 80896   ;;  %vm1206_vm6 = vcmask (!%p214_p2), 277504   ;;  %vm1223_vm7 = vcmask (!%p214_p2), 392192  }
   0x9   : > { %1534 = vmatpush3.bf16.msra.mxu0 (!%p214_p2), %v1531_v3  ;;  %v1543_v16 = vpack.c.bf16 (!%p214_p2), %v278_v14, %v277_v13 }
   0xa   : > { %1536 = vmatprep.subr.bf16.mxu0 (!%p214_p2), %v1535_v5  ;;  %1559 = vmatprep.subr.msk.bf16.mxu1 (!%p214_p2), %vm1719_vm3, %v1547_v10 }
   0xb   : > { %1560 = vmatpush3.bf16.msk.msra.mxu1 (!%p214_p2), %vm1719_vm3, %v1547_v10 }
   0xd   : > { %s2003_s29 = smov (!%p244_p3, %s1301_s29), 31  ;;  %1538 = vmatpush3.bf16.msra.mxu0 %v1535_v5 }
   0xe   : > { %s1302_s16 = sshll.u32 %s2003_s29, 3  ;;  %1540 = vmatprep.subr.bf16.mxu0 %v1539_v11 }
   0xf   : > { %s1734_s24 = scalar_lea.vmem %s1993_s0, %s1302_s16  ;;  %s1917_s15 = scalar_lea.vmem %s1999_s6, %s1302_s16 }
  0x10   : > { %v255_v15 = vld [vmem:[%s1734_s24] sm:$0xff]  ;;  %v256_v17 = vld [vmem:[%s1734_s24 + $0x8] sm:$0xff]  ;;  %v257_v18 = vld [vmem:[%s1734_s24 + $0x10] sm:$0xff] }
  0x11   : > { %1451 = vmatprep.mubr.msk.f32.mxu0 %vm279_vm1, %v255_v15  ;;  %1542 = vmatpush3.bf16.msra.mxu0 %v1539_v11  ;;  %v258_v19 = vld [vmem:[%s1734_s24 + $0x18] sm:$0xff]  ;;  %v259_v20 = vld [vmem:[%s1734_s24 + $0x20] sm:$0xff]  ;;  %v260_v21 = vld [vmem:[%s1734_s24 + $0x28] sm:$0xff] }
  0x12   : > { %1544 = vmatprep.subr.bf16.mxu0 %v1543_v16  ;;  %v261_v22 = vld [vmem:[%s1734_s24 + $0x30] sm:$0xff]  ;;  %v262_v23 = vld [vmem:[%s1734_s24 + $0x38] sm:$0xff]  ;;  %v263_v24 = vld [vmem:[%s1734_s24 + $0x40] sm:$0xff] }
  0x13   : > { %v264_v25 = vld [vmem:[%s1734_s24 + $0x48] sm:$0xff]  ;;  %v265_v26 = vld [vmem:[%s1734_s24 + $0x50] sm:$0xff]  ;;  %v266_v27 = vld [vmem:[%s1734_s24 + $0x58] sm:$0xff] }
  0x14   : > { %v267_v28 = vld [vmem:[%s1734_s24 + $0x60] sm:$0xff]  ;;  %v268_v29 = vld [vmem:[%s1734_s24 + $0x68] sm:$0xff]  ;;  %v269_v30 = vld [vmem:[%s1734_s24 + $0x70] sm:$0xff] }
  0x15   : > { %1546 = vmatpush3.bf16.msra.mxu0 %v1543_v16  ;;  %v270_v31 = vld [vmem:[%s1734_s24 + $0x78] sm:$0xff] }
  0x16   : > { %1549 = vmatprep.subr.msk.bf16.mxu0 %vm1719_vm3, %v1547_v10 }
  0x18   : > { %1452 = vmatmul.mubr.msk.f32.vlgmr.msra.gmra.mrb[0].mxu0 %vm279_vm1, %v256_v17 }
  0x19   : > { %1454 = vmatprep.mubr.msk.f32.mxu0 %vm279_vm1, %v257_v18  ;;  %1552 = vmatpush3.bf16.msk.msra.mxu0 %vm1719_vm3, %v1547_v10 }
  0x1c   : > { %1455 = vmatmul.mubr.msk.f32.gmra.mrb[2].mxu0 %vm279_vm1, %v258_v19 }
  0x1d   : > { %1457 = vmatprep.mubr.msk.f32.mxu0 %vm279_vm1, %v259_v20 }
  0x20   : > { %1458 = vmatmul.mubr.msk.f32.gmra.mrb[4].mxu0 %vm279_vm1, %v260_v21 }
  0x21   : > { %1460 = vmatprep.mubr.msk.f32.mxu0 %vm279_vm1, %v261_v22 }
  0x24   : > { %1461 = vmatmul.mubr.msk.f32.gmra.mrb[6].mxu0 %vm279_vm1, %v262_v23 }
  0x25   : > { %1463 = vmatprep.mubr.msk.f32.mxu0 %vm279_vm1, %v263_v24 }
  0x28   : > { %1464 = vmatmul.mubr.msk.f32.gmra.mrb[8].mxu0 %vm279_vm1, %v264_v25 }
  0x29   : > { %1466 = vmatprep.mubr.msk.f32.mxu0 %vm279_vm1, %v265_v26 }
  0x2c   : > { %1467 = vmatmul.mubr.msk.f32.gmra.mrb[10].mxu0 %vm279_vm1, %v266_v27 }
  0x2d   : > { %1469 = vmatprep.mubr.msk.f32.mxu0 %vm279_vm1, %v267_v28 }
  0x30   : > { %1470 = vmatmul.mubr.msk.f32.gmra.mrb[12].mxu0 %vm279_vm1, %v268_v29 }
  0x31   : > { %1472 = vmatprep.mubr.msk.f32.mxu0 %vm279_vm1, %v269_v30 }
  0x34   : > { %1473 = vmatmul.mubr.msk.f32.gmra.mrb[14].mxu0 %vm279_vm1, %v270_v31 }
  0xeb   : > { %v1453_v32 = vpop.f32.mrb[0].mxu0 }
  0xec   : > { %1573 = vlog2.f32 %v1453_v32  ;;  %v394_v33 = vpop.f32.mrb[1].mxu0 }
  0xed   : > { %1575 = vlog2.f32 %v394_v33 }
  0xef   : > { %v1456_v34 = vpop.f32.mrb[2].mxu0 }
  0xf0   : > { %1577 = vlog2.f32 %v1456_v34  ;;  %v404_v35 = vpop.f32.mrb[3].mxu0 }
  0xf1   : > { %1579 = vlog2.f32 %v404_v35 }
  0xf3   : > { %v1459_v36 = vpop.f32.mrb[4].mxu0 }
  0xf4   : > { %1581 = vlog2.f32 %v1459_v36  ;;  %v414_v37 = vpop.f32.mrb[5].mxu0 }
  0xf5   : > { %1583 = vlog2.f32 %v414_v37 }
  0xf6   : > { %v1574_v38 = vpop.eup %1573 }
  0xf7   : > { %v1576_v39 = vpop.eup %1575  ;;  %v476_v40 = vmul.f32 0.6931472, %v1574_v38  ;;  %v1462_v41 = vpop.f32.mrb[6].mxu0 }
  0xf8   : > { %v474_v42 = vmul.f32 0.6931472, %v1576_v39  ;;  %1585 = vlog2.f32 %v1462_v41  ;;  %v424_v43 = vpop.f32.mrb[7].mxu0 }
  0xf9   : > { %v506_v44 = vmul.f32 0.10399545, %v476_v40  ;;  %1587 = vlog2.f32 %v424_v43 }
  0xfa   : > { %v1578_v45 = vpop.eup %1577  ;;  %v505_v46 = vmul.f32 0.10399545, %v474_v42 }
  0xfb   : > { %v1580_v47 = vpop.eup %1579  ;;  %v1322_v48 = vadd.f32 -1.0, %v506_v44  ;;  %v480_v49 = vmul.f32 0.6931472, %v1578_v45  ;;  %v1465_v50 = vpop.f32.mrb[8].mxu0 }
  0xfc   : > { %v1321_v51 = vadd.f32 -1.0, %v505_v46  ;;  %v478_v52 = vmul.f32 0.6931472, %v1580_v47  ;;  %1589 = vlog2.f32 %v1465_v50  ;;  %v434_v53 = vpop.f32.mrb[9].mxu0 }
  0xfd   : > { %1591 = vtanh.f32 %v1322_v48  ;;  %v508_v54 = vmul.f32 0.10399545, %v480_v49 }
  0xfe   : > { %v1582_v55 = vpop.eup %1581  ;;  %1593 = vtanh.f32 %v1321_v51  ;;  %v507_v56 = vmul.f32 0.10399545, %v478_v52  ;;  %v792_v52 = vld [vmem:[%s1997_s4] sm:$0xff] }
  0xff   : > { %v1584_v57 = vpop.eup %1583  ;;  %v1324_v58 = vadd.f32 -1.0, %v508_v54  ;;  %v484_v59 = vmul.f32 0.6931472, %v1582_v55  ;;  %1595 = vlog2.f32 %v434_v53  ;;  %v1468_v60 = vpop.f32.mrb[10].mxu0  ;;  %v793_v53 = vld [vmem:[%s1997_s4 + $0x8] sm:$0x3f] }
 0x100   : > { %v1323_v61 = vadd.f32 -1.0, %v507_v56  ;;  %v482_v62 = vmul.f32 0.6931472, %v1584_v57  ;;  %1597 = vlog2.f32 %v1468_v60  ;;  %v444_v63 = vpop.f32.mrb[11].mxu0  ;;  %v1553_v56 = vpack.c.bf16 %v793_v53, %v792_v52  ;;  %v1355_v53 = vld [vmem:[%s1998_s5] ss:$0 sm:$0xff] }
 0x101   : > { %1599 = vtanh.f32 %v1324_v58  ;;  %v510_v0 = vmul.f32 0.10399545, %v484_v59 }
 0x102   : > { %v1586_v1 = vpop.eup %1585  ;;  %1601 = vtanh.f32 %v1323_v61  ;;  %v509_v2 = vmul.f32 0.10399545, %v482_v62  ;;  %1555 = vmatprep.subr.msk.bf16.mxu1 %vm1719_vm3, %v1553_v56 }
 0x103   : > { %v1588_v3 = vpop.eup %1587  ;;  %v1326_v4 = vadd.f32 -1.0, %v510_v0  ;;  %v488_v5 = vmul.f32 0.6931472, %v1586_v1  ;;  %1603 = vlog2.f32 %v444_v63  ;;  %v1471_v6 = vpop.f32.mrb[12].mxu0 }
 0x104   : > { %v1325_v7 = vadd.f32 -1.0, %v509_v2  ;;  %v486_v8 = vmul.f32 0.6931472, %v1588_v3  ;;  %1605 = vlog2.f32 %v1471_v6  ;;  %v454_v9 = vpop.f32.mrb[13].mxu0  ;;  %v1825_v3 = vld [vmem:[%s1996_s3] ss:$0 sm:$0xff] }
 0x105   : > { %1607 = vtanh.f32 %v1326_v4  ;;  %v512_v10 = vmul.f32 0.10399545, %v488_v5 }
 0x106   : > { %v1590_v11 = vpop.eup %1589  ;;  %1609 = vtanh.f32 %v1325_v7  ;;  %v511_v13 = vmul.f32 0.10399545, %v486_v8 }
 0x107   : > { %v1592_v14 = vpop.eup %1591  ;;  %v1328_v15 = vadd.f32 -1.0, %v512_v10  ;;  %v492_v16 = vmul.f32 0.6931472, %v1590_v11  ;;  %1611 = vlog2.f32 %v454_v9  ;;  %v1474_v17 = vpop.f32.mrb[14].mxu0 }
 0x108   : > { %v1594_v18 = vpop.eup %1593  ;;  %v1327_v19 = vadd.f32 -1.0, %v511_v13  ;;  %1613 = vlog2.f32 %v1474_v17  ;;  %1143 = vrot.lane.b32.xlu1 %v1592_v14, %s1646_s25  ;;  %v464_v20 = vpop.f32.mrb[15].mxu0 }
 0x109   : > { %v1596_v21 = vpop.eup %1595  ;;  %1615 = vtanh.f32 %v1328_v15  ;;  %v514_v22 = vmul.f32 0.10399545, %v492_v16  ;;  %1141 = vrot.lane.b32.xlu0 %v1594_v18, %s1646_s25  ;;  %1479 = vmatprep.mubr.msk.f32.mxu0 %vm555_vm4, %v1594_v18 }
 0x10a   : > { %v1598_v23 = vpop.eup %1597  ;;  %1617 = vtanh.f32 %v1327_v19  ;;  %v490_v24 = vmul.f32 0.6931472, %v1596_v21  ;;  %1480 = vmatmul.mubr.msk.f32.vlgmr.msra.gmra.mrb[16].mxu0 %vm555_vm4, %v1592_v14 }
 0x10b   : > { %v1600_v25 = vpop.eup %1599  ;;  %v1330_v26 = vadd.f32 -1.0, %v514_v22  ;;  %v496_v27 = vmul.f32 0.6931472, %v1598_v23  ;;  %1619 = vlog2.f32 %v464_v20 }
 0x10c   : > { %v1602_v28 = vpop.eup %1601  ;;  %v513_v29 = vmul.f32 0.10399545, %v490_v24  ;;  %1147 = vrot.lane.b32.xlu1 %v1600_v25, %s1646_s25 }
 0x10d   : > { %v1604_v30 = vpop.eup %1603  ;;  %1621 = vtanh.f32 %v1330_v26  ;;  %v516_v31 = vmul.f32 0.10399545, %v496_v27  ;;  %1145 = vrot.lane.b32.xlu0 %v1602_v28, %s1646_s25  ;;  %1482 = vmatprep.mubr.msk.f32.mxu0 %vm555_vm4, %v1602_v28 }
 0x10e   : > { %v1606_v32 = vpop.eup %1605  ;;  %v1329_v33 = vadd.f32 -1.0, %v513_v29  ;;  %v494_v34 = vmul.f32 0.6931472, %v1604_v30  ;;  %1483 = vmatmul.mubr.msk.f32.gmra.mrb[18].mxu0 %vm555_vm4, %v1600_v25 }
 0x10f   : > { %v1608_v35 = vpop.eup %1607  ;;  %v1332_v36 = vadd.f32 -1.0, %v516_v31  ;;  %v500_v37 = vmul.f32 0.6931472, %v1606_v32 }
 0x110   : > { %v1610_v38 = vpop.eup %1609  ;;  %1623 = vtanh.f32 %v1329_v33  ;;  %v515_v39 = vmul.f32 0.10399545, %v494_v34  ;;  %1151 = vrot.lane.b32.xlu1 %v1608_v35, %s1646_s25 }
 0x111   : > { %v1612_v40 = vpop.eup %1611  ;;  %1625 = vtanh.f32 %v1332_v36  ;;  %v518_v41 = vmul.f32 0.10399545, %v500_v37  ;;  %1149 = vrot.lane.b32.xlu0 %v1610_v38, %s1646_s25  ;;  %1485 = vmatprep.mubr.msk.f32.mxu1 %vm555_vm4, %v1610_v38 }
 0x112   : > { %v1614_v42 = vpop.eup %1613  ;;  %v1331_v43 = vadd.f32 -1.0, %v515_v39  ;;  %v498_v44 = vmul.f32 0.6931472, %v1612_v40  ;;  %1486 = vmatmul.mubr.msk.f32.vlgmr.msra.gmra.mrb[0].mxu1 %vm555_vm4, %v1608_v35 }
 0x113   : > { %v1616_v45 = vpop.eup %1615  ;;  %v1334_v46 = vadd.f32 -1.0, %v518_v41  ;;  %v504_v47 = vmul.f32 0.6931472, %v1614_v42  ;;  %1558 = vmatpush3.bf16.msk.msra.mxu1 %vm1719_vm3, %v1553_v56 }
 0x114   : > { %v1618_v48 = vpop.eup %1617  ;;  %1627 = vtanh.f32 %v1331_v43  ;;  %v517_v49 = vmul.f32 0.10399545, %v498_v44  ;;  %1155 = vrot.lane.b32.xlu1 %v1616_v45, %s1646_s25 }
 0x115   : > { %v1620_v50 = vpop.eup %1619  ;;  %1629 = vtanh.f32 %v1334_v46  ;;  %v520_v51 = vmul.f32 0.10399545, %v504_v47  ;;  %1153 = vrot.lane.b32.xlu0 %v1618_v48, %s1646_s25  ;;  %1488 = vmatprep.mubr.msk.f32.mxu1 %vm555_vm4, %v1618_v48 }
 0x116   : > { %v1333_v54 = vadd.f32 -1.0, %v517_v49  ;;  %v502_v55 = vmul.f32 0.6931472, %v1620_v50  ;;  %1489 = vmatmul.mubr.msk.f32.gmra.mrb[2].mxu1 %vm555_vm4, %v1616_v45 }
 0x117   : > { %v1622_v57 = vpop.eup %1621  ;;  %v1336_v59 = vadd.f32 -1.0, %v520_v51 }
 0x118   : > { %1631 = vtanh.f32 %v1333_v54  ;;  %v519_v58 = vmul.f32 0.10399545, %v502_v55  ;;  %1159 = vrot.lane.b32.xlu1 %v1622_v57, %s1646_s25 }
 0x11a   : > { %v1624_v60 = vpop.eup %1623  ;;  %v1335_v61 = vadd.f32 -1.0, %v519_v58 }
 0x11b   : > { %v1626_v62 = vpop.eup %1625  ;;  %1157 = vrot.lane.b32.xlu0 %v1624_v60, %s1646_s25  ;;  %1491 = vmatprep.mubr.msk.f32.mxu1 %vm555_vm4, %v1624_v60 }
 0x11c   : > { %1633 = vtanh.f32 %v1335_v61  ;;  %1492 = vmatmul.mubr.msk.f32.gmra.mrb[4].mxu1 %vm555_vm4, %v1622_v57  ;;  %1163 = vrot.lane.b32.xlu1 %v1626_v62, %s1646_s25 }
 0x11d   : > { %1635 = vtanh.f32 %v1336_v59 }
 0x11e   : > { %v1628_v63 = vpop.eup %1627 }
 0x11f   : > { %v1630_v0 = vpop.eup %1629  ;;  %1161 = vrot.lane.b32.xlu0 %v1628_v63, %s1646_s25  ;;  %1494 = vmatprep.mubr.msk.f32.mxu1 %vm555_vm4, %v1628_v63 }
 0x120   : > { %1495 = vmatmul.mubr.msk.f32.gmra.mrb[6].mxu1 %vm555_vm4, %v1626_v62  ;;  %1167 = vrot.lane.b32.xlu1 %v1630_v0, %s1646_s25 }
 0x122   : > { %v1632_v12 = vpop.eup %1631 }
 0x123   : > { %1165 = vrot.lane.b32.xlu0 %v1632_v12, %s1646_s25  ;;  %1497 = vmatprep.mubr.msk.f32.mxu1 %vm555_vm4, %v1632_v12 }
 0x124   : > { %1498 = vmatmul.mubr.msk.f32.gmra.mrb[8].mxu1 %vm555_vm4, %v1630_v0 }
 0x126   : > { %v1814_v1 = vpop.eup %1633 }
 0x127   : > { %v1816_v2 = vpop.eup %1635  ;;  %1500 = vmatprep.mubr.msk.f32.mxu1 %vm555_vm4, %v1814_v1 }
 0x128   : > { %1501 = vmatmul.mubr.msk.f32.gmra.mrb[10].mxu1 %vm555_vm4, %v1816_v2 }
 0x1dd   : > { %v1481_v4 = vpop.f32.mrb[16].mxu0 }
 0x1de   : > { %v761_v5 = vadd.f32 %v1481_v4, %v1825_v3  ;;  %1031 = vrot.lane.b32.xlu0 %v1481_v4, %s1647_s9  ;;  %v674_v6 = vpop.f32.mrb[17].mxu0 }
 0x1df   : > { %v760_v7 = vadd.f32 %v1825_v3, %v674_v6 }
 0x1e0   : > { %v777_v10 = vmax.f32 %v761_v5, 0.0 }
 0x1e1   : > { %v776_v8 = vmax.f32 %v760_v7, 0.0  ;;  %v1484_v9 = vpop.f32.mrb[18].mxu0 }
 0x1e2   : > { %v763_v11 = vadd.f32 %v1484_v9, %v1825_v3  ;;  %1029 = vrot.lane.b32.xlu0 %v674_v6, %s1647_s9  ;;  %1035 = vrot.lane.b32.xlu1 %v1484_v9, %s1647_s9  ;;  %v684_v13 = vpop.f32.mrb[19].mxu0 }
 0x1e3   : > { %v762_v14 = vadd.f32 %v1825_v3, %v684_v13  ;;  %1507 = vmatprep.mubr.msk.f32.mxu1 %vm555_vm4, %v776_v8 }
 0x1e4   : > { %1508 = vmatmul.mubr.msk.f32.vlgmr.msra.gmra.mrb[12].mxu1 %vm555_vm4, %v777_v10  ;;  %v779_v17 = vmax.f32 %v763_v11, 0.0 }
 0x1e5   : > { %v778_v15 = vmax.f32 %v762_v14, 0.0  ;;  %v1487_v16 = vpop.f32.mrb[0].mxu1 }
 0x1e6   : > { %v765_v18 = vadd.f32 %v1487_v16, %v1825_v3  ;;  %v694_v19 = vpop.f32.mrb[1].mxu1  ;;  %1033 = vrot.lane.b32.xlu1 %v684_v13, %s1647_s9 }
 0x1e7   : > { %v764_v20 = vadd.f32 %v1825_v3, %v694_v19  ;;  %1037 = vrot.lane.b32.xlu0 %v694_v19, %s1647_s9  ;;  %1510 = vmatprep.mubr.msk.f32.mxu1 %vm555_vm4, %v778_v15 }
 0x1e8   : > { %1511 = vmatmul.mubr.msk.f32.gmra.mrb[14].mxu1 %vm555_vm4, %v779_v17  ;;  %v781_v23 = vmax.f32 %v765_v18, 0.0 }
 0x1e9   : > { %v780_v21 = vmax.f32 %v764_v20, 0.0  ;;  %v1490_v22 = vpop.f32.mrb[2].mxu1 }
 0x1ea   : > { %v767_v24 = vadd.f32 %v1490_v22, %v1825_v3  ;;  %v704_v25 = vpop.f32.mrb[3].mxu1  ;;  %1039 = vrot.lane.b32.xlu1 %v1487_v16, %s1647_s9 }
 0x1eb   : > { %v766_v26 = vadd.f32 %v1825_v3, %v704_v25  ;;  %1041 = vrot.lane.b32.xlu0 %v704_v25, %s1647_s9  ;;  %1513 = vmatprep.mubr.msk.f32.mxu1 %vm555_vm4, %v780_v21 }
 0x1ec   : > { %1514 = vmatmul.mubr.msk.f32.gmra.mrb[16].mxu1 %vm555_vm4, %v781_v23  ;;  %v783_v28 = vmax.f32 %v767_v24, 0.0 }
 0x1ed   : > { %v782_v27 = vmax.f32 %v766_v26, 0.0 }
 0x1ee   : > { %1043 = vrot.lane.b32.xlu1 %v1490_v22, %s1647_s9 }
 0x1ef   : > { %v1493_v29 = vpop.f32.mrb[4].mxu1  ;;  %1516 = vmatprep.mubr.msk.f32.mxu1 %vm555_vm4, %v782_v27 }
 0x1f0   : > { %v769_v30 = vadd.f32 %v1493_v29, %v1825_v3  ;;  %v714_v31 = vpop.f32.mrb[5].mxu1  ;;  %1517 = vmatmul.mubr.msk.f32.gmra.mrb[18].mxu1 %vm555_vm4, %v783_v28 }
 0x1f1   : > { %v768_v32 = vadd.f32 %v1825_v3, %v714_v31  ;;  %1045 = vrot.lane.b32.xlu0 %v714_v31, %s1647_s9 }
 0x1f2   : > { %1047 = vrot.lane.b32.xlu1 %v1493_v29, %s1647_s9  ;;  %v785_v35 = vmax.f32 %v769_v30, 0.0 }
 0x1f3   : > { %v784_v33 = vmax.f32 %v768_v32, 0.0  ;;  %v1496_v34 = vpop.f32.mrb[6].mxu1 }
 0x1f4   : > { %v771_v36 = vadd.f32 %v1496_v34, %v1825_v3  ;;  %v724_v37 = vpop.f32.mrb[7].mxu1 }
 0x1f5   : > { %v770_v38 = vadd.f32 %v1825_v3, %v724_v37  ;;  %1049 = vrot.lane.b32.xlu0 %v724_v37, %s1647_s9  ;;  %1519 = vmatprep.mubr.msk.f32.mxu1 %vm555_vm4, %v784_v33 }
 0x1f6   : > { %1520 = vmatmul.mubr.msk.f32.gmra.mrb[20].mxu1 %vm555_vm4, %v785_v35  ;;  %1051 = vrot.lane.b32.xlu1 %v1496_v34, %s1647_s9  ;;  %v787_v41 = vmax.f32 %v771_v36, 0.0 }
 0x1f7   : > { %v786_v39 = vmax.f32 %v770_v38, 0.0  ;;  %v1499_v40 = vpop.f32.mrb[8].mxu1  ;;  %v1144_v38 = vpop.permute.xlu1 %1143 }
 0x1f8   : > { %v773_v42 = vadd.f32 %v1499_v40, %v1825_v3  ;;  %v734_v43 = vpop.f32.mrb[9].mxu1 }
 0x1f9   : > { %v772_v44 = vadd.f32 %v1825_v3, %v734_v43  ;;  %1053 = vrot.lane.b32.xlu0 %v734_v43, %s1647_s9  ;;  %1522 = vmatprep.mubr.msk.f32.mxu1 %vm555_vm4, %v786_v39 }
 0x1fa   : > { %1523 = vmatmul.mubr.msk.f32.gmra.mrb[22].mxu1 %vm555_vm4, %v787_v41  ;;  %1055 = vrot.lane.b32.xlu1 %v1499_v40, %s1647_s9  ;;  %v789_v47 = vmax.f32 %v773_v42, 0.0  ;;  %v1142_v40 = vpop.permute.xlu0 %1141 }
 0x1fb   : > { %v788_v45 = vmax.f32 %v772_v44, 0.0  ;;  %v1502_v46 = vpop.f32.mrb[10].mxu1  ;;  %v1148_v42 = vpop.permute.xlu1 %1147 }
 0x1fc   : > { %v775_v48 = vadd.f32 %v1502_v46, %v1825_v3  ;;  %v744_v49 = vpop.f32.mrb[11].mxu1 }
 0x1fd   : > { %v774_v50 = vadd.f32 %v1825_v3, %v744_v49  ;;  %1525 = vmatprep.mubr.msk.f32.mxu1 %vm555_vm4, %v788_v45  ;;  %1057 = vrot.lane.b32.xlu0 %v744_v49, %s1647_s9 }
 0x1fe   : > { %1526 = vmatmul.mubr.msk.f32.gmra.mrb[24].mxu1 %vm555_vm4, %v789_v47  ;;  %1059 = vrot.lane.b32.xlu1 %v1502_v46, %s1647_s9  ;;  %v791_v52 = vmax.f32 %v775_v48, 0.0  ;;  %v1146_v43 = vpop.permute.xlu0 %1145 }
 0x1ff   : > { %v790_v51 = vmax.f32 %v774_v50, 0.0  ;;  %v1152_v44 = vpop.permute.xlu1 %1151 }
 0x201   : > { %1528 = vmatprep.mubr.msk.f32.mxu1 %vm555_vm4, %v790_v51 }
 0x202   : > { %1529 = vmatmul.mubr.msk.f32.gmra.mrb[26].mxu1 %vm555_vm4, %v791_v52  ;;  %v1150_v45 = vpop.permute.xlu0 %1149 }
 0x203   : > { %v1156_v46 = vpop.permute.xlu1 %1155 }
 0x206   : > { %v1154_v47 = vpop.permute.xlu0 %1153 }
 0x207   : > { %v1160_v48 = vpop.permute.xlu1 %1159 }
 0x20a   : > { %v1898_v49 = vpop.permute.xlu0 %1157 }
 0x20b   : > { %v1900_v50 = vpop.permute.xlu1 %1163 }
 0x20e   : > { %v1902_v51 = vpop.permute.xlu0 %1161 }
 0x20f   : > { %v1904_v52 = vpop.permute.xlu1 %1167 }
 0x2b7   : > { %v1509_v54 = vpop.f32.mrb[12].mxu1 }
 0x2b8   : > { %v924_v55 = vadd.f32 %v1509_v54, %v1355_v53  ;;  %v918_v56 = vpop.f32.mrb[13].mxu1 }
 0x2b9   : > { %v919_v57 = vadd.f32 %v1355_v53, %v918_v56 }
 0x2ba   : > { %v998_v58 = vmax.f32 %v924_v55, 0.0 }
 0x2bb   : > { %v997_v59 = vmax.f32 %v919_v57, 0.0  ;;  %v1512_v60 = vpop.f32.mrb[14].mxu1 }
 0x2bc   : > { %v934_v61 = vadd.f32 %v1512_v60, %v1355_v53  ;;  %1095 = vrot.lane.b32.xlu1 %v998_v58, %s1648_s12  ;;  %v928_v62 = vpop.f32.mrb[15].mxu1 }
 0x2bd   : > { %v929_v63 = vadd.f32 %v1355_v53, %v928_v62  ;;  %1093 = vrot.lane.b32.xlu0 %v997_v59, %s1648_s12 }
 0x2be   : > { %v1000_v0 = vmax.f32 %v934_v61, 0.0 }
 0x2bf   : > { %v999_v12 = vmax.f32 %v929_v63, 0.0  ;;  %v1515_v3 = vpop.f32.mrb[16].mxu1 }
 0x2c0   : > { %v944_v4 = vadd.f32 %v1515_v3, %v1355_v53  ;;  %1099 = vrot.lane.b32.xlu1 %v1000_v0, %s1648_s12  ;;  %v938_v5 = vpop.f32.mrb[17].mxu1 }
 0x2c1   : > { %v939_v6 = vadd.f32 %v1355_v53, %v938_v5  ;;  %1097 = vrot.lane.b32.xlu0 %v999_v12, %s1648_s12 }
 0x2c2   : > { %v1002_v7 = vmax.f32 %v944_v4, 0.0 }
 0x2c3   : > { %v1001_v8 = vmax.f32 %v939_v6, 0.0  ;;  %v1518_v9 = vpop.f32.mrb[18].mxu1 }
 0x2c4   : > { %v954_v10 = vadd.f32 %v1518_v9, %v1355_v53  ;;  %1103 = vrot.lane.b32.xlu1 %v1002_v7, %s1648_s12  ;;  %v948_v11 = vpop.f32.mrb[19].mxu1 }
 0x2c5   : > { %v949_v13 = vadd.f32 %v1355_v53, %v948_v11  ;;  %1101 = vrot.lane.b32.xlu0 %v1001_v8, %s1648_s12 }
 0x2c6   : > { %v1004_v14 = vmax.f32 %v954_v10, 0.0 }
 0x2c7   : > { %v1003_v15 = vmax.f32 %v949_v13, 0.0 }
 0x2c8   : > { %1107 = vrot.lane.b32.xlu1 %v1004_v14, %s1648_s12 }
 0x2c9   : > { %v1521_v16 = vpop.f32.mrb[20].mxu1  ;;  %1105 = vrot.lane.b32.xlu0 %v1003_v15, %s1648_s12 }
 0x2ca   : > { %v964_v17 = vadd.f32 %v1521_v16, %v1355_v53  ;;  %v958_v18 = vpop.f32.mrb[21].mxu1 }
 0x2cb   : > { %v959_v19 = vadd.f32 %v1355_v53, %v958_v18 }
 0x2cc   : > { %v1006_v20 = vmax.f32 %v964_v17, 0.0 }
 0x2cd   : > { %v1005_v21 = vmax.f32 %v959_v19, 0.0  ;;  %v1524_v22 = vpop.f32.mrb[22].mxu1 }
 0x2ce   : > { %v974_v23 = vadd.f32 %v1524_v22, %v1355_v53  ;;  %1111 = vrot.lane.b32.xlu1 %v1006_v20, %s1648_s12  ;;  %v968_v24 = vpop.f32.mrb[23].mxu1 }
 0x2cf   : > { %v969_v25 = vadd.f32 %v1355_v53, %v968_v24  ;;  %1109 = vrot.lane.b32.xlu0 %v1005_v21, %s1648_s12 }
 0x2d0   : > { %v1008_v26 = vmax.f32 %v974_v23, 0.0 }
 0x2d1   : > { %v1007_v27 = vmax.f32 %v969_v25, 0.0  ;;  %v1527_v28 = vpop.f32.mrb[24].mxu1 }
 0x2d2   : > { %v984_v29 = vadd.f32 %v1527_v28, %v1355_v53  ;;  %1115 = vrot.lane.b32.xlu1 %v1008_v26, %s1648_s12  ;;  %v978_v30 = vpop.f32.mrb[25].mxu1 }
 0x2d3   : > { %v979_v31 = vadd.f32 %v1355_v53, %v978_v30  ;;  %1113 = vrot.lane.b32.xlu0 %v1007_v27, %s1648_s12 }
 0x2d4   : > { %v1010_v32 = vmax.f32 %v984_v29, 0.0 }
 0x2d5   : > { %v1009_v33 = vmax.f32 %v979_v31, 0.0  ;;  %v1530_v34 = vpop.f32.mrb[26].mxu1 }
 0x2d6   : > { %v994_v35 = vadd.f32 %v1530_v34, %v1355_v53  ;;  %1119 = vrot.lane.b32.xlu1 %v1010_v32, %s1648_s12  ;;  %v988_v36 = vpop.f32.mrb[27].mxu1 }
 0x2d7   : > { %v989_v37 = vadd.f32 %v1355_v53, %v988_v36  ;;  %1117 = vrot.lane.b32.xlu0 %v1009_v33, %s1648_s12  ;;  %v1906_v53 = vpop.permute.xlu0 %1165 }
 0x2d8   : > { %v1012_v39 = vmax.f32 %v994_v35, 0.0 }
 0x2d9   : > { %v1011_v41 = vmax.f32 %v989_v37, 0.0 }
 0x2da   : > { %1123 = vrot.lane.b32.xlu1 %v1012_v39, %s1648_s12 }
 0x2db   : > { %1121 = vrot.lane.b32.xlu0 %v1011_v41, %s1648_s12  ;;  %v1032_v54 = vpop.permute.xlu0 %1031 }
 0x2de   : > { %1171 = vrot.lane.b32.xlu1 %v1816_v2, %s1646_s25  ;;  %v1036_v2 = vpop.permute.xlu1 %1035 }
 0x2df   : > { %1169 = vrot.lane.b32.xlu0 %v1814_v1, %s1646_s25  ;;  %v1030_v1 = vpop.permute.xlu0 %1029 }
 0x2e2   : > { %v1034_v55 = vpop.permute.xlu1 %1033 }
 0x2e3   : > { %v1038_v57 = vpop.permute.xlu0 %1037 }
 0x2e6   : > { %v1040_v56 = vpop.permute.xlu1 %1039 }
 0x2e7   : > { %v1042_v59 = vpop.permute.xlu0 %1041 }
 0x2ea   : > { %v1044_v58 = vpop.permute.xlu1 %1043 }
 0x2eb   : > { %v1046_v61 = vpop.permute.xlu0 %1045 }
 0x2ee   : > { %v1048_v60 = vpop.permute.xlu1 %1047 }
 0x2ef   : > { %v1050_v63 = vpop.permute.xlu0 %1049 }
 0x2f2   : > { %v1052_v62 = vpop.permute.xlu1 %1051 }
 0x2f3   : > { %v1054_v12 = vpop.permute.xlu0 %1053 }
 0x2f6   : > { %v1056_v0 = vpop.permute.xlu1 %1055 }
 0x2f7   : > { %v1910_v4 = vpop.permute.xlu0 %1057 }
 0x2fa   : > { %v1908_v3 = vpop.permute.xlu1 %1059 }
 0x32e   : > { %v1096_v5 = vpop.permute.xlu1 %1095 }
 0x32f   : > { %v1191_v6 = vsel %vm1189_vm5, %v1032_v54, %v1096_v5  ;;  %v1094_v7 = vpop.permute.xlu0 %1093 }
 0x330   : > { %v1208_v8 = vsel %vm1206_vm6, %v1191_v6, %v1144_v38  ;;  %v1190_v9 = vsel %vm1189_vm5, %v1030_v1, %v1094_v7 }
 0x331   : > { %1225 = vst.msk [vmem:[%s1917_s15 + $0x8] sm:$0xff] %vm1223_vm7, %v1208_v8  ;;  %v1207_v10 = vsel %vm1206_vm6, %v1190_v9, %v1142_v40 }
 0x332   : > { %1224 = vst.msk [vmem:[%s1917_s15] sm:$0xff] %vm1223_vm7, %v1207_v10  ;;  %v1100_v11 = vpop.permute.xlu1 %1099 }
 0x333   : > { %v1193_v13 = vsel %vm1189_vm5, %v1036_v2, %v1100_v11  ;;  %v1098_v14 = vpop.permute.xlu0 %1097 }
 0x334   : > { %v1210_v15 = vsel %vm1206_vm6, %v1193_v13, %v1148_v42  ;;  %v1192_v16 = vsel %vm1189_vm5, %v1034_v55, %v1098_v14 }
 0x335   : > { %1227 = vst.msk [vmem:[%s1917_s15 + $0x18] sm:$0xff] %vm1223_vm7, %v1210_v15  ;;  %v1209_v17 = vsel %vm1206_vm6, %v1192_v16, %v1146_v43 }
 0x336   : > { %1226 = vst.msk [vmem:[%s1917_s15 + $0x10] sm:$0xff] %vm1223_vm7, %v1209_v17  ;;  %v1104_v18 = vpop.permute.xlu1 %1103 }
 0x337   : > { %v1195_v19 = vsel %vm1189_vm5, %v1040_v56, %v1104_v18  ;;  %v1102_v20 = vpop.permute.xlu0 %1101 }
 0x338   : > { %v1212_v21 = vsel %vm1206_vm6, %v1195_v19, %v1152_v44  ;;  %v1194_v22 = vsel %vm1189_vm5, %v1038_v57, %v1102_v20 }
 0x339   : > { %1229 = vst.msk [vmem:[%s1917_s15 + $0x28] sm:$0xff] %vm1223_vm7, %v1212_v21  ;;  %v1211_v23 = vsel %vm1206_vm6, %v1194_v22, %v1150_v45 }
 0x33a   : > { %1228 = vst.msk [vmem:[%s1917_s15 + $0x20] sm:$0xff] %vm1223_vm7, %v1211_v23  ;;  %v1108_v24 = vpop.permute.xlu1 %1107 }
 0x33b   : > { %v1197_v25 = vsel %vm1189_vm5, %v1044_v58, %v1108_v24  ;;  %v1106_v26 = vpop.permute.xlu0 %1105 }
 0x33c   : > { %v1214_v27 = vsel %vm1206_vm6, %v1197_v25, %v1156_v46  ;;  %v1196_v28 = vsel %vm1189_vm5, %v1042_v59, %v1106_v26 }
 0x33d   : > { %1231 = vst.msk [vmem:[%s1917_s15 + $0x38] sm:$0xff] %vm1223_vm7, %v1214_v27  ;;  %v1213_v29 = vsel %vm1206_vm6, %v1196_v28, %v1154_v47 }
 0x33e   : > { %1230 = vst.msk [vmem:[%s1917_s15 + $0x30] sm:$0xff] %vm1223_vm7, %v1213_v29 }
 0x340   : > { %v1112_v30 = vpop.permute.xlu1 %1111 }
 0x341   : > { %v1199_v31 = vsel %vm1189_vm5, %v1048_v60, %v1112_v30  ;;  %v1110_v32 = vpop.permute.xlu0 %1109 }
 0x342   : > { %v1216_v33 = vsel %vm1206_vm6, %v1199_v31, %v1160_v48  ;;  %v1198_v34 = vsel %vm1189_vm5, %v1046_v61, %v1110_v32 }
 0x343   : > { %1233 = vst.msk [vmem:[%s1917_s15 + $0x48] sm:$0xff] %vm1223_vm7, %v1216_v33  ;;  %v1215_v35 = vsel %vm1206_vm6, %v1198_v34, %v1898_v49 }
 0x344   : > { %1232 = vst.msk [vmem:[%s1917_s15 + $0x40] sm:$0xff] %vm1223_vm7, %v1215_v35  ;;  %v1116_v36 = vpop.permute.xlu1 %1115 }
 0x345   : > { %v1201_v37 = vsel %vm1189_vm5, %v1052_v62, %v1116_v36  ;;  %v1114_v38 = vpop.permute.xlu0 %1113 }
 0x346   : > { %v1218_v39 = vsel %vm1206_vm6, %v1201_v37, %v1900_v50  ;;  %v1200_v40 = vsel %vm1189_vm5, %v1050_v63, %v1114_v38 }
 0x347   : > { %1235 = vst.msk [vmem:[%s1917_s15 + $0x58] sm:$0xff] %vm1223_vm7, %v1218_v39  ;;  %v1217_v41 = vsel %vm1206_vm6, %v1200_v40, %v1902_v51 }
 0x348   : > { %1234 = vst.msk [vmem:[%s1917_s15 + $0x50] sm:$0xff] %vm1223_vm7, %v1217_v41  ;;  %v1120_v42 = vpop.permute.xlu1 %1119 }
 0x349   : > { %v1203_v43 = vsel %vm1189_vm5, %v1056_v0, %v1120_v42  ;;  %v1118_v44 = vpop.permute.xlu0 %1117 }
 0x34a   : > { %v1220_v45 = vsel %vm1206_vm6, %v1203_v43, %v1904_v52  ;;  %v1202_v46 = vsel %vm1189_vm5, %v1054_v12, %v1118_v44 }
 0x34b   : > { %1237 = vst.msk [vmem:[%s1917_s15 + $0x68] sm:$0xff] %vm1223_vm7, %v1220_v45  ;;  %v1219_v47 = vsel %vm1206_vm6, %v1202_v46, %v1906_v53 }
 0x34c   : > { %1236 = vst.msk [vmem:[%s1917_s15 + $0x60] sm:$0xff] %vm1223_vm7, %v1219_v47  ;;  %v1124_v48 = vpop.permute.xlu1 %1123 }
 0x34d   : > { %v1122_v49 = vpop.permute.xlu0 %1121  ;;  %v1205_v50 = vsel %vm1189_vm5, %v1908_v3, %v1124_v48 }
 0x34e   : > { %v1204_v2 = vsel %vm1189_vm5, %v1910_v4, %v1122_v49 }
 0x350   : > { %v1172_v51 = vpop.permute.xlu1 %1171 }
 0x351   : > { %v1222_v52 = vsel %vm1206_vm6, %v1205_v50, %v1172_v51  ;;  %v1170_v54 = vpop.permute.xlu0 %1169 }
 0x352   : > { %1239 = vst.msk [vmem:[%s1917_s15 + $0x78] sm:$0xff] %vm1223_vm7, %v1222_v52  ;;  %v1221_v55 = vsel %vm1206_vm6, %v1204_v2, %v1170_v54 }
 0x353   : > { %1238 = vst.msk [vmem:[%s1917_s15 + $0x70] sm:$0xff] %vm1223_vm7, %v1221_v55 }
 0x354 PF: > { %s16_s21 = sadd.s32 1, %s1643_s21  }
 0x355   : > { %p13_p4 = scmp.ge.s32.totalorder %s16_s21, 4  }
 0x357   :  { %15 = sbr.rel (!%p13_p4) target bundleno = 1 (0x1), region = 74 }

</bundles_post_ra>
